<compile_context>
chip_gen: v7x
topology: tpu7x:2x2x1
jax: 0.10.0
libtpu: 0.0.40
codegen_flags: <defaults>
</compile_context>

<pallas_src>
import jax
import jax.numpy as jnp
from jax import lax
from jax.experimental import pallas as pl
from jax.experimental.pallas import tpu as pltpu

HIDDEN = 16
IN_FEATURES = 3
LANES = 128
CHUNK_ROWS = 8            # one (8,128) vreg per value inside the register-resident chunk loop
MAX_ROWS_PER_TILE = 2048  # 2048*128 = 256K batch elems/tile (~4 MiB per buffer set, VMEM-safe on v5e/v6e/v7x)
MIN_ROWS_PER_TILE = 512   # >=64K elems/tile so the ~0.35 us per-grid-step overhead stays amortized


def _round_up(n, m):
    return ((n + m - 1) // m) * m


def churn_mlp_kernel(x_ref, w1_ref, b1_ref, w2_ref, b2_ref, o_ref):
    # x_ref : VMEM [3, rows_tile, 128]   (batch on sublanes x lanes)
    # w1_ref: SMEM [3, 16], b1_ref: SMEM [16], w2_ref: SMEM [16], b2_ref: SMEM [1]
    # o_ref : VMEM [rows_tile, 128]
    rows_tile, lanes = o_ref.shape
    num_chunks = rows_tile // CHUNK_ROWS

    # Hoist every SMEM scalar read out of the per-chunk loop: read once at kernel entry.
    w1 = [[w1_ref[k, j] for j in range(HIDDEN)] for k in range(IN_FEATURES)]
    b1 = [b1_ref[j] for j in range(HIDDEN)]
    w2 = [w2_ref[j] for j in range(HIDDEN)]
    b2 = b2_ref[0]

    def body(c, carry):
        r0 = pl.multiple_of(c * CHUNK_ROWS, CHUNK_ROWS)
        x0 = x_ref[0, pl.ds(r0, CHUNK_ROWS), :]          # [8, 128]
        x1 = x_ref[1, pl.ds(r0, CHUNK_ROWS), :]
        x2 = x_ref[2, pl.ds(r0, CHUNK_ROWS), :]
        acc = jnp.full((CHUNK_ROWS, lanes), b2, dtype=jnp.float32)
        # Unrolled 16-hidden-unit VPU chain fused with the layer-2 accumulation
        # (no [16, chunk, 128] intermediate is ever materialized).
        for j in range(HIDDEN):
            h = w1[0][j] * x0 + w1[1][j] * x1 + w1[2][j] * x2 + b1[j]
            h = jnp.maximum(h, 0.0)                       # ReLU; Dropout(0.3) = identity (eval)
            acc = acc + w2[j] * h
        o_ref[pl.ds(r0, CHUNK_ROWS), :] = acc
        return carry

    lax.fori_loop(0, num_chunks, body, 0, unroll=min(4, num_chunks))


def churn_model_forward(x, w1, b1, w2, b2):
    """Exact ChurnModel.forward (eval mode).

    x : [B, 3] float32
    w1: [3, 16]  (PyTorch fc.0.weight.T)      b1: [16]
    w2: [16]     (PyTorch fc.3.weight.T[:,0]) b2: [1]
    returns [B, 1] float32
    """
    B = x.shape[0]

    rows = _round_up(pl.cdiv(B, LANES), CHUNK_ROWS)
    # Tile choice: aim for >=8 grid steps at large B (megacore / v7x 2-TC sharding via
    # "parallel"), but never below MIN_ROWS_PER_TILE (per-step overhead) nor above MAX (VMEM).
    target = _round_up(pl.cdiv(rows, 8), CHUNK_ROWS)
    rows_tile = min(MAX_ROWS_PER_TILE, max(MIN_ROWS_PER_TILE, target), rows)
    rows_pad = _round_up(rows, rows_tile)
    B_pad = rows_pad * LANES
    grid = (rows_pad // rows_tile,)

    # Feature-major relayout: pad + transpose + reshape fuse into a single XLA copy under jit
    # (no separate pad materialization pass).
    # TODO(synk): ideally the producer emits x feature-major so this copy disappears entirely.
    xt = jnp.pad(x, ((0, B_pad - B), (0, 0))).T.reshape(IN_FEATURES, rows_pad, LANES)

    out = pl.pallas_call(
        churn_mlp_kernel,
        out_shape=jax.ShapeDtypeStruct((rows_pad, LANES), jnp.float32),
        grid=grid,
        in_specs=[
            # Batch-tiled, sublane+lane-dense activation block.
            pl.BlockSpec((IN_FEATURES, rows_tile, LANES), lambda i: (0, i, 0)),
            # Parameters: whole arrays, resident in SMEM for the full grid (no per-tile DMA).
            pl.BlockSpec(memory_space=pltpu.MemorySpace.SMEM),
            pl.BlockSpec(memory_space=pltpu.MemorySpace.SMEM),
            pl.BlockSpec(memory_space=pltpu.MemorySpace.SMEM),
            pl.BlockSpec(memory_space=pltpu.MemorySpace.SMEM),
        ],
        out_specs=pl.BlockSpec((rows_tile, LANES), lambda i: (i, 0)),
        compiler_params=pltpu.CompilerParams(
            dimension_semantics=("parallel",),   # shards the batch grid over both v7x TCs
        ),
    )(xt, w1, b1, w2, b2)

    # Back to the PyTorch-facing [B, 1] layout (outside the kernel).
    return out.reshape(B_pad)[:B].reshape(B, 1)


def init_params(key):
    """Deterministic init matching the PyTorch layer shapes (uniform +/- 1/sqrt(fan_in)):
       fc.0: Linear(3, 16)  -> w1 [3,16], b1 [16]
       fc.3: Linear(16, 1)  -> w2 [16],   b2 [1]"""
    k1, k2, k3, k4 = jax.random.split(key, 4)
    bound1 = 1.0 / jnp.sqrt(3.0)
    bound2 = 1.0 / jnp.sqrt(16.0)
    w1 = jax.random.uniform(k1, (IN_FEATURES, HIDDEN), jnp.float32, -bound1, bound1)
    b1 = jax.random.uniform(k2, (HIDDEN,), jnp.float32, -bound1, bound1)
    w2 = jax.random.uniform(k3, (HIDDEN,), jnp.float32, -bound2, bound2)
    b2 = jax.random.uniform(k4, (1,), jnp.float32, -bound2, bound2)
    return w1, b1, w2, b2


if __name__ == "__main__":
    key = jax.random.PRNGKey(0)
    kx, kp = jax.random.split(key)

    B = 8  # small demo batch (kernel pays off at B in the tens of thousands+)
    x = jax.random.normal(kx, (B, IN_FEATURES), jnp.float32)
    w1, b1, w2, b2 = init_params(kp)

    fwd = jax.jit(churn_model_forward)
    out = jax.block_until_ready(fwd(x, w1, b1, w2, b2))

    # Reference in plain JAX (same math as the PyTorch forward, eval mode).
    ref = jnp.maximum(x @ w1 + b1[None, :], 0.0) @ w2[:, None] + b2[None, :]
    assert out.shape == (B, 1)
    assert jnp.allclose(out, ref, atol=1e-5, rtol=1e-5)

    print("KERNEL_OK")
</pallas_src>

<mosaic_0001>
module attributes {stable_mosaic.version = 11 : i64} {
  func.func @churn_mlp_kernel(%arg0: i32, %arg1: memref<3x8x128xf32, #tpu.memory_space<vmem>>, %arg2: memref<3x16xf32, #tpu.memory_space<smem>>, %arg3: memref<16xf32, #tpu.memory_space<smem>>, %arg4: memref<16xf32, #tpu.memory_space<smem>>, %arg5: memref<1xf32, #tpu.memory_space<smem>>, %arg6: memref<8x128xf32, #tpu.memory_space<vmem>>) attributes {dimension_semantics = [#tpu.dimension_semantics<parallel>], iteration_bounds = array<i64: 1>, scalar_prefetch = 0 : i64, scratch_operands = 0 : i64, tpu.core_type = #tpu.core_type<tc>, window_params = [{transform_indices = @transform_0, window_bounds = array<i64: 3, 8, 128>}, {transform_indices = @transform_1, window_bounds = array<i64: 3, 16>}, {transform_indices = @transform_2, window_bounds = array<i64: 16>}, {transform_indices = @transform_3, window_bounds = array<i64: 16>}, {transform_indices = @transform_4, window_bounds = array<i64: 1>}, {transform_indices = @transform_5, window_bounds = array<i64: 8, 128>}]} {
    %c0 = arith.constant 0 : index
    %c0_0 = arith.constant 0 : index
    %0 = memref.load %arg2[%c0, %c0_0] : memref<3x16xf32, #tpu.memory_space<smem>>
    %c0_1 = arith.constant 0 : index
    %c1 = arith.constant 1 : index
    %1 = memref.load %arg2[%c0_1, %c1] : memref<3x16xf32, #tpu.memory_space<smem>>
    %c0_2 = arith.constant 0 : index
    %c2 = arith.constant 2 : index
    %2 = memref.load %arg2[%c0_2, %c2] : memref<3x16xf32, #tpu.memory_space<smem>>
    %c0_3 = arith.constant 0 : index
    %c3 = arith.constant 3 : index
    %3 = memref.load %arg2[%c0_3, %c3] : memref<3x16xf32, #tpu.memory_space<smem>>
    %c0_4 = arith.constant 0 : index
    %c4 = arith.constant 4 : index
    %4 = memref.load %arg2[%c0_4, %c4] : memref<3x16xf32, #tpu.memory_space<smem>>
    %c0_5 = arith.constant 0 : index
    %c5 = arith.constant 5 : index
    %5 = memref.load %arg2[%c0_5, %c5] : memref<3x16xf32, #tpu.memory_space<smem>>
    %c0_6 = arith.constant 0 : index
    %c6 = arith.constant 6 : index
    %6 = memref.load %arg2[%c0_6, %c6] : memref<3x16xf32, #tpu.memory_space<smem>>
    %c0_7 = arith.constant 0 : index
    %c7 = arith.constant 7 : index
    %7 = memref.load %arg2[%c0_7, %c7] : memref<3x16xf32, #tpu.memory_space<smem>>
    %c0_8 = arith.constant 0 : index
    %c8 = arith.constant 8 : index
    %8 = memref.load %arg2[%c0_8, %c8] : memref<3x16xf32, #tpu.memory_space<smem>>
    %c0_9 = arith.constant 0 : index
    %c9 = arith.constant 9 : index
    %9 = memref.load %arg2[%c0_9, %c9] : memref<3x16xf32, #tpu.memory_space<smem>>
    %c0_10 = arith.constant 0 : index
    %c10 = arith.constant 10 : index
    %10 = memref.load %arg2[%c0_10, %c10] : memref<3x16xf32, #tpu.memory_space<smem>>
    %c0_11 = arith.constant 0 : index
    %c11 = arith.constant 11 : index
    %11 = memref.load %arg2[%c0_11, %c11] : memref<3x16xf32, #tpu.memory_space<smem>>
    %c0_12 = arith.constant 0 : index
    %c12 = arith.constant 12 : index
    %12 = memref.load %arg2[%c0_12, %c12] : memref<3x16xf32, #tpu.memory_space<smem>>
    %c0_13 = arith.constant 0 : index
    %c13 = arith.constant 13 : index
    %13 = memref.load %arg2[%c0_13, %c13] : memref<3x16xf32, #tpu.memory_space<smem>>
    %c0_14 = arith.constant 0 : index
    %c14 = arith.constant 14 : index
    %14 = memref.load %arg2[%c0_14, %c14] : memref<3x16xf32, #tpu.memory_space<smem>>
    %c0_15 = arith.constant 0 : index
    %c15 = arith.constant 15 : index
    %15 = memref.load %arg2[%c0_15, %c15] : memref<3x16xf32, #tpu.memory_space<smem>>
    %c1_16 = arith.constant 1 : index
    %c0_17 = arith.constant 0 : index
    %16 = memref.load %arg2[%c1_16, %c0_17] : memref<3x16xf32, #tpu.memory_space<smem>>
    %c1_18 = arith.constant 1 : index
    %c1_19 = arith.constant 1 : index
    %17 = memref.load %arg2[%c1_18, %c1_19] : memref<3x16xf32, #tpu.memory_space<smem>>
    %c1_20 = arith.constant 1 : index
    %c2_21 = arith.constant 2 : index
    %18 = memref.load %arg2[%c1_20, %c2_21] : memref<3x16xf32, #tpu.memory_space<smem>>
    %c1_22 = arith.constant 1 : index
    %c3_23 = arith.constant 3 : index
    %19 = memref.load %arg2[%c1_22, %c3_23] : memref<3x16xf32, #tpu.memory_space<smem>>
    %c1_24 = arith.constant 1 : index
    %c4_25 = arith.constant 4 : index
    %20 = memref.load %arg2[%c1_24, %c4_25] : memref<3x16xf32, #tpu.memory_space<smem>>
    %c1_26 = arith.constant 1 : index
    %c5_27 = arith.constant 5 : index
    %21 = memref.load %arg2[%c1_26, %c5_27] : memref<3x16xf32, #tpu.memory_space<smem>>
    %c1_28 = arith.constant 1 : index
    %c6_29 = arith.constant 6 : index
    %22 = memref.load %arg2[%c1_28, %c6_29] : memref<3x16xf32, #tpu.memory_space<smem>>
    %c1_30 = arith.constant 1 : index
    %c7_31 = arith.constant 7 : index
    %23 = memref.load %arg2[%c1_30, %c7_31] : memref<3x16xf32, #tpu.memory_space<smem>>
    %c1_32 = arith.constant 1 : index
    %c8_33 = arith.constant 8 : index
    %24 = memref.load %arg2[%c1_32, %c8_33] : memref<3x16xf32, #tpu.memory_space<smem>>
    %c1_34 = arith.constant 1 : index
    %c9_35 = arith.constant 9 : index
    %25 = memref.load %arg2[%c1_34, %c9_35] : memref<3x16xf32, #tpu.memory_space<smem>>
    %c1_36 = arith.constant 1 : index
    %c10_37 = arith.constant 10 : index
    %26 = memref.load %arg2[%c1_36, %c10_37] : memref<3x16xf32, #tpu.memory_space<smem>>
    %c1_38 = arith.constant 1 : index
    %c11_39 = arith.constant 11 : index
    %27 = memref.load %arg2[%c1_38, %c11_39] : memref<3x16xf32, #tpu.memory_space<smem>>
    %c1_40 = arith.constant 1 : index
    %c12_41 = arith.constant 12 : index
    %28 = memref.load %arg2[%c1_40, %c12_41] : memref<3x16xf32, #tpu.memory_space<smem>>
    %c1_42 = arith.constant 1 : index
    %c13_43 = arith.constant 13 : index
    %29 = memref.load %arg2[%c1_42, %c13_43] : memref<3x16xf32, #tpu.memory_space<smem>>
    %c1_44 = arith.constant 1 : index
    %c14_45 = arith.constant 14 : index
    %30 = memref.load %arg2[%c1_44, %c14_45] : memref<3x16xf32, #tpu.memory_space<smem>>
    %c1_46 = arith.constant 1 : index
    %c15_47 = arith.constant 15 : index
    %31 = memref.load %arg2[%c1_46, %c15_47] : memref<3x16xf32, #tpu.memory_space<smem>>
    %c2_48 = arith.constant 2 : index
    %c0_49 = arith.constant 0 : index
    %32 = memref.load %arg2[%c2_48, %c0_49] : memref<3x16xf32, #tpu.memory_space<smem>>
    %c2_50 = arith.constant 2 : index
    %c1_51 = arith.constant 1 : index
    %33 = memref.load %arg2[%c2_50, %c1_51] : memref<3x16xf32, #tpu.memory_space<smem>>
    %c2_52 = arith.constant 2 : index
    %c2_53 = arith.constant 2 : index
    %34 = memref.load %arg2[%c2_52, %c2_53] : memref<3x16xf32, #tpu.memory_space<smem>>
    %c2_54 = arith.constant 2 : index
    %c3_55 = arith.constant 3 : index
    %35 = memref.load %arg2[%c2_54, %c3_55] : memref<3x16xf32, #tpu.memory_space<smem>>
    %c2_56 = arith.constant 2 : index
    %c4_57 = arith.constant 4 : index
    %36 = memref.load %arg2[%c2_56, %c4_57] : memref<3x16xf32, #tpu.memory_space<smem>>
    %c2_58 = arith.constant 2 : index
    %c5_59 = arith.constant 5 : index
    %37 = memref.load %arg2[%c2_58, %c5_59] : memref<3x16xf32, #tpu.memory_space<smem>>
    %c2_60 = arith.constant 2 : index
    %c6_61 = arith.constant 6 : index
    %38 = memref.load %arg2[%c2_60, %c6_61] : memref<3x16xf32, #tpu.memory_space<smem>>
    %c2_62 = arith.constant 2 : index
    %c7_63 = arith.constant 7 : index
    %39 = memref.load %arg2[%c2_62, %c7_63] : memref<3x16xf32, #tpu.memory_space<smem>>
    %c2_64 = arith.constant 2 : index
    %c8_65 = arith.constant 8 : index
    %40 = memref.load %arg2[%c2_64, %c8_65] : memref<3x16xf32, #tpu.memory_space<smem>>
    %c2_66 = arith.constant 2 : index
    %c9_67 = arith.constant 9 : index
    %41 = memref.load %arg2[%c2_66, %c9_67] : memref<3x16xf32, #tpu.memory_space<smem>>
    %c2_68 = arith.constant 2 : index
    %c10_69 = arith.constant 10 : index
    %42 = memref.load %arg2[%c2_68, %c10_69] : memref<3x16xf32, #tpu.memory_space<smem>>
    %c2_70 = arith.constant 2 : index
    %c11_71 = arith.constant 11 : index
    %43 = memref.load %arg2[%c2_70, %c11_71] : memref<3x16xf32, #tpu.memory_space<smem>>
    %c2_72 = arith.constant 2 : index
    %c12_73 = arith.constant 12 : index
    %44 = memref.load %arg2[%c2_72, %c12_73] : memref<3x16xf32, #tpu.memory_space<smem>>
    %c2_74 = arith.constant 2 : index
    %c13_75 = arith.constant 13 : index
    %45 = memref.load %arg2[%c2_74, %c13_75] : memref<3x16xf32, #tpu.memory_space<smem>>
    %c2_76 = arith.constant 2 : index
    %c14_77 = arith.constant 14 : index
    %46 = memref.load %arg2[%c2_76, %c14_77] : memref<3x16xf32, #tpu.memory_space<smem>>
    %c2_78 = arith.constant 2 : index
    %c15_79 = arith.constant 15 : index
    %47 = memref.load %arg2[%c2_78, %c15_79] : memref<3x16xf32, #tpu.memory_space<smem>>
    %c0_80 = arith.constant 0 : index
    %48 = memref.load %arg3[%c0_80] : memref<16xf32, #tpu.memory_space<smem>>
    %c1_81 = arith.constant 1 : index
    %49 = memref.load %arg3[%c1_81] : memref<16xf32, #tpu.memory_space<smem>>
    %c2_82 = arith.constant 2 : index
    %50 = memref.load %arg3[%c2_82] : memref<16xf32, #tpu.memory_space<smem>>
    %c3_83 = arith.constant 3 : index
    %51 = memref.load %arg3[%c3_83] : memref<16xf32, #tpu.memory_space<smem>>
    %c4_84 = arith.constant 4 : index
    %52 = memref.load %arg3[%c4_84] : memref<16xf32, #tpu.memory_space<smem>>
    %c5_85 = arith.constant 5 : index
    %53 = memref.load %arg3[%c5_85] : memref<16xf32, #tpu.memory_space<smem>>
    %c6_86 = arith.constant 6 : index
    %54 = memref.load %arg3[%c6_86] : memref<16xf32, #tpu.memory_space<smem>>
    %c7_87 = arith.constant 7 : index
    %55 = memref.load %arg3[%c7_87] : memref<16xf32, #tpu.memory_space<smem>>
    %c8_88 = arith.constant 8 : index
    %56 = memref.load %arg3[%c8_88] : memref<16xf32, #tpu.memory_space<smem>>
    %c9_89 = arith.constant 9 : index
    %57 = memref.load %arg3[%c9_89] : memref<16xf32, #tpu.memory_space<smem>>
    %c10_90 = arith.constant 10 : index
    %58 = memref.load %arg3[%c10_90] : memref<16xf32, #tpu.memory_space<smem>>
    %c11_91 = arith.constant 11 : index
    %59 = memref.load %arg3[%c11_91] : memref<16xf32, #tpu.memory_space<smem>>
    %c12_92 = arith.constant 12 : index
    %60 = memref.load %arg3[%c12_92] : memref<16xf32, #tpu.memory_space<smem>>
    %c13_93 = arith.constant 13 : index
    %61 = memref.load %arg3[%c13_93] : memref<16xf32, #tpu.memory_space<smem>>
    %c14_94 = arith.constant 14 : index
    %62 = memref.load %arg3[%c14_94] : memref<16xf32, #tpu.memory_space<smem>>
    %c15_95 = arith.constant 15 : index
    %63 = memref.load %arg3[%c15_95] : memref<16xf32, #tpu.memory_space<smem>>
    %c0_96 = arith.constant 0 : index
    %64 = memref.load %arg4[%c0_96] : memref<16xf32, #tpu.memory_space<smem>>
    %c1_97 = arith.constant 1 : index
    %65 = memref.load %arg4[%c1_97] : memref<16xf32, #tpu.memory_space<smem>>
    %c2_98 = arith.constant 2 : index
    %66 = memref.load %arg4[%c2_98] : memref<16xf32, #tpu.memory_space<smem>>
    %c3_99 = arith.constant 3 : index
    %67 = memref.load %arg4[%c3_99] : memref<16xf32, #tpu.memory_space<smem>>
    %c4_100 = arith.constant 4 : index
    %68 = memref.load %arg4[%c4_100] : memref<16xf32, #tpu.memory_space<smem>>
    %c5_101 = arith.constant 5 : index
    %69 = memref.load %arg4[%c5_101] : memref<16xf32, #tpu.memory_space<smem>>
    %c6_102 = arith.constant 6 : index
    %70 = memref.load %arg4[%c6_102] : memref<16xf32, #tpu.memory_space<smem>>
    %c7_103 = arith.constant 7 : index
    %71 = memref.load %arg4[%c7_103] : memref<16xf32, #tpu.memory_space<smem>>
    %c8_104 = arith.constant 8 : index
    %72 = memref.load %arg4[%c8_104] : memref<16xf32, #tpu.memory_space<smem>>
    %c9_105 = arith.constant 9 : index
    %73 = memref.load %arg4[%c9_105] : memref<16xf32, #tpu.memory_space<smem>>
    %c10_106 = arith.constant 10 : index
    %74 = memref.load %arg4[%c10_106] : memref<16xf32, #tpu.memory_space<smem>>
    %c11_107 = arith.constant 11 : index
    %75 = memref.load %arg4[%c11_107] : memref<16xf32, #tpu.memory_space<smem>>
    %c12_108 = arith.constant 12 : index
    %76 = memref.load %arg4[%c12_108] : memref<16xf32, #tpu.memory_space<smem>>
    %c13_109 = arith.constant 13 : index
    %77 = memref.load %arg4[%c13_109] : memref<16xf32, #tpu.memory_space<smem>>
    %c14_110 = arith.constant 14 : index
    %78 = memref.load %arg4[%c14_110] : memref<16xf32, #tpu.memory_space<smem>>
    %c15_111 = arith.constant 15 : index
    %79 = memref.load %arg4[%c15_111] : memref<16xf32, #tpu.memory_space<smem>>
    %c0_112 = arith.constant 0 : index
    %80 = memref.load %arg5[%c0_112] : memref<1xf32, #tpu.memory_space<smem>>
    %c0_i32 = arith.constant 0 : i32
    %c8_i32 = arith.constant 8 : i32
    %81 = arith.muli %c0_i32, %c8_i32 : i32
    %82 = tpu.assume_multiple %81, 8 : i32
    %c0_113 = arith.constant 0 : index
    %83 = arith.index_cast %82 : i32 to index
    %c0_114 = arith.constant 0 : index
    %84 = vector.load %arg1[%c0_113, %83, %c0_114] : memref<3x8x128xf32, #tpu.memory_space<vmem>>, vector<1x8x128xf32>
    %85 = vector.shape_cast %84 : vector<1x8x128xf32> to vector<8x128xf32>
    %c1_115 = arith.constant 1 : index
    %86 = arith.index_cast %82 : i32 to index
    %c0_116 = arith.constant 0 : index
    %87 = vector.load %arg1[%c1_115, %86, %c0_116] : memref<3x8x128xf32, #tpu.memory_space<vmem>>, vector<1x8x128xf32>
    %88 = vector.shape_cast %87 : vector<1x8x128xf32> to vector<8x128xf32>
    %c2_117 = arith.constant 2 : index
    %89 = arith.index_cast %82 : i32 to index
    %c0_118 = arith.constant 0 : index
    %90 = vector.load %arg1[%c2_117, %89, %c0_118] : memref<3x8x128xf32, #tpu.memory_space<vmem>>, vector<1x8x128xf32>
    %91 = vector.shape_cast %90 : vector<1x8x128xf32> to vector<8x128xf32>
    %92 = vector.broadcast %80 : f32 to vector<8x128xf32>
    %93 = vector.broadcast %0 : f32 to vector<8x128xf32>
    %94 = arith.mulf %93, %85 : vector<8x128xf32>
    %95 = vector.broadcast %16 : f32 to vector<8x128xf32>
    %96 = arith.mulf %95, %88 : vector<8x128xf32>
    %97 = arith.addf %94, %96 : vector<8x128xf32>
    %98 = vector.broadcast %32 : f32 to vector<8x128xf32>
    %99 = arith.mulf %98, %91 : vector<8x128xf32>
    %100 = arith.addf %97, %99 : vector<8x128xf32>
    %101 = vector.broadcast %48 : f32 to vector<8x128xf32>
    %102 = arith.addf %100, %101 : vector<8x128xf32>
    %cst = arith.constant 0.000000e+00 : f32
    %103 = vector.broadcast %cst : f32 to vector<8x128xf32>
    %104 = arith.maximumf %102, %103 : vector<8x128xf32>
    %105 = vector.broadcast %64 : f32 to vector<8x128xf32>
    %106 = arith.mulf %105, %104 : vector<8x128xf32>
    %107 = arith.addf %92, %106 : vector<8x128xf32>
    %108 = vector.broadcast %1 : f32 to vector<8x128xf32>
    %109 = arith.mulf %108, %85 : vector<8x128xf32>
    %110 = vector.broadcast %17 : f32 to vector<8x128xf32>
    %111 = arith.mulf %110, %88 : vector<8x128xf32>
    %112 = arith.addf %109, %111 : vector<8x128xf32>
    %113 = vector.broadcast %33 : f32 to vector<8x128xf32>
    %114 = arith.mulf %113, %91 : vector<8x128xf32>
    %115 = arith.addf %112, %114 : vector<8x128xf32>
    %116 = vector.broadcast %49 : f32 to vector<8x128xf32>
    %117 = arith.addf %115, %116 : vector<8x128xf32>
    %cst_119 = arith.constant 0.000000e+00 : f32
    %118 = vector.broadcast %cst_119 : f32 to vector<8x128xf32>
    %119 = arith.maximumf %117, %118 : vector<8x128xf32>
    %120 = vector.broadcast %65 : f32 to vector<8x128xf32>
    %121 = arith.mulf %120, %119 : vector<8x128xf32>
    %122 = arith.addf %107, %121 : vector<8x128xf32>
    %123 = vector.broadcast %2 : f32 to vector<8x128xf32>
    %124 = arith.mulf %123, %85 : vector<8x128xf32>
    %125 = vector.broadcast %18 : f32 to vector<8x128xf32>
    %126 = arith.mulf %125, %88 : vector<8x128xf32>
    %127 = arith.addf %124, %126 : vector<8x128xf32>
    %128 = vector.broadcast %34 : f32 to vector<8x128xf32>
    %129 = arith.mulf %128, %91 : vector<8x128xf32>
    %130 = arith.addf %127, %129 : vector<8x128xf32>
    %131 = vector.broadcast %50 : f32 to vector<8x128xf32>
    %132 = arith.addf %130, %131 : vector<8x128xf32>
    %cst_120 = arith.constant 0.000000e+00 : f32
    %133 = vector.broadcast %cst_120 : f32 to vector<8x128xf32>
    %134 = arith.maximumf %132, %133 : vector<8x128xf32>
    %135 = vector.broadcast %66 : f32 to vector<8x128xf32>
    %136 = arith.mulf %135, %134 : vector<8x128xf32>
    %137 = arith.addf %122, %136 : vector<8x128xf32>
    %138 = vector.broadcast %3 : f32 to vector<8x128xf32>
    %139 = arith.mulf %138, %85 : vector<8x128xf32>
    %140 = vector.broadcast %19 : f32 to vector<8x128xf32>
    %141 = arith.mulf %140, %88 : vector<8x128xf32>
    %142 = arith.addf %139, %141 : vector<8x128xf32>
    %143 = vector.broadcast %35 : f32 to vector<8x128xf32>
    %144 = arith.mulf %143, %91 : vector<8x128xf32>
    %145 = arith.addf %142, %144 : vector<8x128xf32>
    %146 = vector.broadcast %51 : f32 to vector<8x128xf32>
    %147 = arith.addf %145, %146 : vector<8x128xf32>
    %cst_121 = arith.constant 0.000000e+00 : f32
    %148 = vector.broadcast %cst_121 : f32 to vector<8x128xf32>
    %149 = arith.maximumf %147, %148 : vector<8x128xf32>
    %150 = vector.broadcast %67 : f32 to vector<8x128xf32>
    %151 = arith.mulf %150, %149 : vector<8x128xf32>
    %152 = arith.addf %137, %151 : vector<8x128xf32>
    %153 = vector.broadcast %4 : f32 to vector<8x128xf32>
    %154 = arith.mulf %153, %85 : vector<8x128xf32>
    %155 = vector.broadcast %20 : f32 to vector<8x128xf32>
    %156 = arith.mulf %155, %88 : vector<8x128xf32>
    %157 = arith.addf %154, %156 : vector<8x128xf32>
    %158 = vector.broadcast %36 : f32 to vector<8x128xf32>
    %159 = arith.mulf %158, %91 : vector<8x128xf32>
    %160 = arith.addf %157, %159 : vector<8x128xf32>
    %161 = vector.broadcast %52 : f32 to vector<8x128xf32>
    %162 = arith.addf %160, %161 : vector<8x128xf32>
    %cst_122 = arith.constant 0.000000e+00 : f32
    %163 = vector.broadcast %cst_122 : f32 to vector<8x128xf32>
    %164 = arith.maximumf %162, %163 : vector<8x128xf32>
    %165 = vector.broadcast %68 : f32 to vector<8x128xf32>
    %166 = arith.mulf %165, %164 : vector<8x128xf32>
    %167 = arith.addf %152, %166 : vector<8x128xf32>
    %168 = vector.broadcast %5 : f32 to vector<8x128xf32>
    %169 = arith.mulf %168, %85 : vector<8x128xf32>
    %170 = vector.broadcast %21 : f32 to vector<8x128xf32>
    %171 = arith.mulf %170, %88 : vector<8x128xf32>
    %172 = arith.addf %169, %171 : vector<8x128xf32>
    %173 = vector.broadcast %37 : f32 to vector<8x128xf32>
    %174 = arith.mulf %173, %91 : vector<8x128xf32>
    %175 = arith.addf %172, %174 : vector<8x128xf32>
    %176 = vector.broadcast %53 : f32 to vector<8x128xf32>
    %177 = arith.addf %175, %176 : vector<8x128xf32>
    %cst_123 = arith.constant 0.000000e+00 : f32
    %178 = vector.broadcast %cst_123 : f32 to vector<8x128xf32>
    %179 = arith.maximumf %177, %178 : vector<8x128xf32>
    %180 = vector.broadcast %69 : f32 to vector<8x128xf32>
    %181 = arith.mulf %180, %179 : vector<8x128xf32>
    %182 = arith.addf %167, %181 : vector<8x128xf32>
    %183 = vector.broadcast %6 : f32 to vector<8x128xf32>
    %184 = arith.mulf %183, %85 : vector<8x128xf32>
    %185 = vector.broadcast %22 : f32 to vector<8x128xf32>
    %186 = arith.mulf %185, %88 : vector<8x128xf32>
    %187 = arith.addf %184, %186 : vector<8x128xf32>
    %188 = vector.broadcast %38 : f32 to vector<8x128xf32>
    %189 = arith.mulf %188, %91 : vector<8x128xf32>
    %190 = arith.addf %187, %189 : vector<8x128xf32>
    %191 = vector.broadcast %54 : f32 to vector<8x128xf32>
    %192 = arith.addf %190, %191 : vector<8x128xf32>
    %cst_124 = arith.constant 0.000000e+00 : f32
    %193 = vector.broadcast %cst_124 : f32 to vector<8x128xf32>
    %194 = arith.maximumf %192, %193 : vector<8x128xf32>
    %195 = vector.broadcast %70 : f32 to vector<8x128xf32>
    %196 = arith.mulf %195, %194 : vector<8x128xf32>
    %197 = arith.addf %182, %196 : vector<8x128xf32>
    %198 = vector.broadcast %7 : f32 to vector<8x128xf32>
    %199 = arith.mulf %198, %85 : vector<8x128xf32>
    %200 = vector.broadcast %23 : f32 to vector<8x128xf32>
    %201 = arith.mulf %200, %88 : vector<8x128xf32>
    %202 = arith.addf %199, %201 : vector<8x128xf32>
    %203 = vector.broadcast %39 : f32 to vector<8x128xf32>
    %204 = arith.mulf %203, %91 : vector<8x128xf32>
    %205 = arith.addf %202, %204 : vector<8x128xf32>
    %206 = vector.broadcast %55 : f32 to vector<8x128xf32>
    %207 = arith.addf %205, %206 : vector<8x128xf32>
    %cst_125 = arith.constant 0.000000e+00 : f32
    %208 = vector.broadcast %cst_125 : f32 to vector<8x128xf32>
    %209 = arith.maximumf %207, %208 : vector<8x128xf32>
    %210 = vector.broadcast %71 : f32 to vector<8x128xf32>
    %211 = arith.mulf %210, %209 : vector<8x128xf32>
    %212 = arith.addf %197, %211 : vector<8x128xf32>
    %213 = vector.broadcast %8 : f32 to vector<8x128xf32>
    %214 = arith.mulf %213, %85 : vector<8x128xf32>
    %215 = vector.broadcast %24 : f32 to vector<8x128xf32>
    %216 = arith.mulf %215, %88 : vector<8x128xf32>
    %217 = arith.addf %214, %216 : vector<8x128xf32>
    %218 = vector.broadcast %40 : f32 to vector<8x128xf32>
    %219 = arith.mulf %218, %91 : vector<8x128xf32>
    %220 = arith.addf %217, %219 : vector<8x128xf32>
    %221 = vector.broadcast %56 : f32 to vector<8x128xf32>
    %222 = arith.addf %220, %221 : vector<8x128xf32>
    %cst_126 = arith.constant 0.000000e+00 : f32
    %223 = vector.broadcast %cst_126 : f32 to vector<8x128xf32>
    %224 = arith.maximumf %222, %223 : vector<8x128xf32>
    %225 = vector.broadcast %72 : f32 to vector<8x128xf32>
    %226 = arith.mulf %225, %224 : vector<8x128xf32>
    %227 = arith.addf %212, %226 : vector<8x128xf32>
    %228 = vector.broadcast %9 : f32 to vector<8x128xf32>
    %229 = arith.mulf %228, %85 : vector<8x128xf32>
    %230 = vector.broadcast %25 : f32 to vector<8x128xf32>
    %231 = arith.mulf %230, %88 : vector<8x128xf32>
    %232 = arith.addf %229, %231 : vector<8x128xf32>
    %233 = vector.broadcast %41 : f32 to vector<8x128xf32>
    %234 = arith.mulf %233, %91 : vector<8x128xf32>
    %235 = arith.addf %232, %234 : vector<8x128xf32>
    %236 = vector.broadcast %57 : f32 to vector<8x128xf32>
    %237 = arith.addf %235, %236 : vector<8x128xf32>
    %cst_127 = arith.constant 0.000000e+00 : f32
    %238 = vector.broadcast %cst_127 : f32 to vector<8x128xf32>
    %239 = arith.maximumf %237, %238 : vector<8x128xf32>
    %240 = vector.broadcast %73 : f32 to vector<8x128xf32>
    %241 = arith.mulf %240, %239 : vector<8x128xf32>
    %242 = arith.addf %227, %241 : vector<8x128xf32>
    %243 = vector.broadcast %10 : f32 to vector<8x128xf32>
    %244 = arith.mulf %243, %85 : vector<8x128xf32>
    %245 = vector.broadcast %26 : f32 to vector<8x128xf32>
    %246 = arith.mulf %245, %88 : vector<8x128xf32>
    %247 = arith.addf %244, %246 : vector<8x128xf32>
    %248 = vector.broadcast %42 : f32 to vector<8x128xf32>
    %249 = arith.mulf %248, %91 : vector<8x128xf32>
    %250 = arith.addf %247, %249 : vector<8x128xf32>
    %251 = vector.broadcast %58 : f32 to vector<8x128xf32>
    %252 = arith.addf %250, %251 : vector<8x128xf32>
    %cst_128 = arith.constant 0.000000e+00 : f32
    %253 = vector.broadcast %cst_128 : f32 to vector<8x128xf32>
    %254 = arith.maximumf %252, %253 : vector<8x128xf32>
    %255 = vector.broadcast %74 : f32 to vector<8x128xf32>
    %256 = arith.mulf %255, %254 : vector<8x128xf32>
    %257 = arith.addf %242, %256 : vector<8x128xf32>
    %258 = vector.broadcast %11 : f32 to vector<8x128xf32>
    %259 = arith.mulf %258, %85 : vector<8x128xf32>
    %260 = vector.broadcast %27 : f32 to vector<8x128xf32>
    %261 = arith.mulf %260, %88 : vector<8x128xf32>
    %262 = arith.addf %259, %261 : vector<8x128xf32>
    %263 = vector.broadcast %43 : f32 to vector<8x128xf32>
    %264 = arith.mulf %263, %91 : vector<8x128xf32>
    %265 = arith.addf %262, %264 : vector<8x128xf32>
    %266 = vector.broadcast %59 : f32 to vector<8x128xf32>
    %267 = arith.addf %265, %266 : vector<8x128xf32>
    %cst_129 = arith.constant 0.000000e+00 : f32
    %268 = vector.broadcast %cst_129 : f32 to vector<8x128xf32>
    %269 = arith.maximumf %267, %268 : vector<8x128xf32>
    %270 = vector.broadcast %75 : f32 to vector<8x128xf32>
    %271 = arith.mulf %270, %269 : vector<8x128xf32>
    %272 = arith.addf %257, %271 : vector<8x128xf32>
    %273 = vector.broadcast %12 : f32 to vector<8x128xf32>
    %274 = arith.mulf %273, %85 : vector<8x128xf32>
    %275 = vector.broadcast %28 : f32 to vector<8x128xf32>
    %276 = arith.mulf %275, %88 : vector<8x128xf32>
    %277 = arith.addf %274, %276 : vector<8x128xf32>
    %278 = vector.broadcast %44 : f32 to vector<8x128xf32>
    %279 = arith.mulf %278, %91 : vector<8x128xf32>
    %280 = arith.addf %277, %279 : vector<8x128xf32>
    %281 = vector.broadcast %60 : f32 to vector<8x128xf32>
    %282 = arith.addf %280, %281 : vector<8x128xf32>
    %cst_130 = arith.constant 0.000000e+00 : f32
    %283 = vector.broadcast %cst_130 : f32 to vector<8x128xf32>
    %284 = arith.maximumf %282, %283 : vector<8x128xf32>
    %285 = vector.broadcast %76 : f32 to vector<8x128xf32>
    %286 = arith.mulf %285, %284 : vector<8x128xf32>
    %287 = arith.addf %272, %286 : vector<8x128xf32>
    %288 = vector.broadcast %13 : f32 to vector<8x128xf32>
    %289 = arith.mulf %288, %85 : vector<8x128xf32>
    %290 = vector.broadcast %29 : f32 to vector<8x128xf32>
    %291 = arith.mulf %290, %88 : vector<8x128xf32>
    %292 = arith.addf %289, %291 : vector<8x128xf32>
    %293 = vector.broadcast %45 : f32 to vector<8x128xf32>
    %294 = arith.mulf %293, %91 : vector<8x128xf32>
    %295 = arith.addf %292, %294 : vector<8x128xf32>
    %296 = vector.broadcast %61 : f32 to vector<8x128xf32>
    %297 = arith.addf %295, %296 : vector<8x128xf32>
    %cst_131 = arith.constant 0.000000e+00 : f32
    %298 = vector.broadcast %cst_131 : f32 to vector<8x128xf32>
    %299 = arith.maximumf %297, %298 : vector<8x128xf32>
    %300 = vector.broadcast %77 : f32 to vector<8x128xf32>
    %301 = arith.mulf %300, %299 : vector<8x128xf32>
    %302 = arith.addf %287, %301 : vector<8x128xf32>
    %303 = vector.broadcast %14 : f32 to vector<8x128xf32>
    %304 = arith.mulf %303, %85 : vector<8x128xf32>
    %305 = vector.broadcast %30 : f32 to vector<8x128xf32>
    %306 = arith.mulf %305, %88 : vector<8x128xf32>
    %307 = arith.addf %304, %306 : vector<8x128xf32>
    %308 = vector.broadcast %46 : f32 to vector<8x128xf32>
    %309 = arith.mulf %308, %91 : vector<8x128xf32>
    %310 = arith.addf %307, %309 : vector<8x128xf32>
    %311 = vector.broadcast %62 : f32 to vector<8x128xf32>
    %312 = arith.addf %310, %311 : vector<8x128xf32>
    %cst_132 = arith.constant 0.000000e+00 : f32
    %313 = vector.broadcast %cst_132 : f32 to vector<8x128xf32>
    %314 = arith.maximumf %312, %313 : vector<8x128xf32>
    %315 = vector.broadcast %78 : f32 to vector<8x128xf32>
    %316 = arith.mulf %315, %314 : vector<8x128xf32>
    %317 = arith.addf %302, %316 : vector<8x128xf32>
    %318 = vector.broadcast %15 : f32 to vector<8x128xf32>
    %319 = arith.mulf %318, %85 : vector<8x128xf32>
    %320 = vector.broadcast %31 : f32 to vector<8x128xf32>
    %321 = arith.mulf %320, %88 : vector<8x128xf32>
    %322 = arith.addf %319, %321 : vector<8x128xf32>
    %323 = vector.broadcast %47 : f32 to vector<8x128xf32>
    %324 = arith.mulf %323, %91 : vector<8x128xf32>
    %325 = arith.addf %322, %324 : vector<8x128xf32>
    %326 = vector.broadcast %63 : f32 to vector<8x128xf32>
    %327 = arith.addf %325, %326 : vector<8x128xf32>
    %cst_133 = arith.constant 0.000000e+00 : f32
    %328 = vector.broadcast %cst_133 : f32 to vector<8x128xf32>
    %329 = arith.maximumf %327, %328 : vector<8x128xf32>
    %330 = vector.broadcast %79 : f32 to vector<8x128xf32>
    %331 = arith.mulf %330, %329 : vector<8x128xf32>
    %332 = arith.addf %317, %331 : vector<8x128xf32>
    %333 = arith.index_cast %82 : i32 to index
    %c0_134 = arith.constant 0 : index
    %334 = vector.load %arg6[%333, %c0_134] : memref<8x128xf32, #tpu.memory_space<vmem>>, vector<8x128xf32>
    tpu.vector_store %arg6[%333, %c0_134], %332 {strides = array<i32>} : memref<8x128xf32, #tpu.memory_space<vmem>>, vector<8x128xf32>,
    %c1_i32 = arith.constant 1 : i32
    return
  }
  func.func @transform_0(%arg0: i32) -> (i32, i32, i32) {
    %c0_i32 = arith.constant 0 : i32
    %c0_i32_0 = arith.constant 0 : i32
    %c0_i32_1 = arith.constant 0 : i32
    return %c0_i32, %arg0, %c0_i32_0 : i32, i32, i32
  }
  func.func @transform_1(%arg0: i32) -> (i32, i32) {
    %c0_i32 = arith.constant 0 : i32
    %c0_i32_0 = arith.constant 0 : i32
    %c0_i32_1 = arith.constant 0 : i32
    return %c0_i32, %c0_i32_0 : i32, i32
  }
  func.func @transform_2(%arg0: i32) -> i32 {
    %c0_i32 = arith.constant 0 : i32
    %c0_i32_0 = arith.constant 0 : i32
    return %c0_i32 : i32
  }
  func.func @transform_3(%arg0: i32) -> i32 {
    %c0_i32 = arith.constant 0 : i32
    %c0_i32_0 = arith.constant 0 : i32
    return %c0_i32 : i32
  }
  func.func @transform_4(%arg0: i32) -> i32 {
    %c0_i32 = arith.constant 0 : i32
    %c0_i32_0 = arith.constant 0 : i32
    return %c0_i32 : i32
  }
  func.func @transform_5(%arg0: i32) -> (i32, i32) {
    %c0_i32 = arith.constant 0 : i32
    %c0_i32_0 = arith.constant 0 : i32
    return %arg0, %c0_i32 : i32, i32
  }
}

</mosaic_0001>

<bundles_post_ra>
// kernel: churn_model_forward.1
= control target key start
LH: loop header
LB: loop body
LE: loop exit
PB: predicated region body
PF: predicated region fallthrough
CT: control target
= control target key end

     0   :  { %11 = vsyncpa [#allocation4], 0  ;;  %s884_s0 = inlined_call_operand.vmem [shape: f32[3,8,128], index: 0, kind: input, shape index: {}]   ;;  %s885_s1 = inlined_call_operand.vmem [shape: f32[3,16], index: 1, kind: input, shape index: {}]   ;;  %s886_s2 = inlined_call_operand.vmem [shape: f32[16], index: 2, kind: input, shape index: {}]   ;;  %s887_s3 = inlined_call_operand.vmem [shape: f32[16], index: 3, kind: input, shape index: {}]   ;;  %s888_s4 = inlined_call_operand.<no memory space> [shape: f32[1], index: 4, kind: input, shape index: {}]   ;;  %s889_s5 = inlined_call_operand.vmem [shape: f32[8,128], index: 5, kind: output, shape index: {}]  }
   0x1   :  { %12 = vsyncpa [#allocation6], 0  ;;  %s31_s20 = sshll.u32 %s886_s2, 4  ;;  %s21_s23 = sshll.u32 %s885_s1, 4  ;;  %s32_s20 = int_to_ptr.vmem [resolvable:$true] %s31_s20  ;;  %s22_s23 = int_to_ptr.vmem [resolvable:$true] %s21_s23 }
   0x2   :  { %s461_s24 = scalar_lea.vmem %s32_s20, 16  ;;  %p466_p1 = scmp.lt.s32.totalorder %s32_s20, %s32_s20 }
   0x3   :  { %p462_p0 = scmp.ne.s32.totalorder %s32_s20, %s461_s24  ;;  %p467_p2 = scmp.lt.s32.totalorder %s461_s24, %s461_s24 }
   0x5   :  { %p468_p3 = por %p467_p2, %p466_p1 }
   0x7   :  { %p469_p4 = pnand %p468_p3, %p462_p0 }
   0x9   :  { %472 = shalt.err (!%p469_p4)
}
   0xa   :  { %s501_s25 = smov [#allocation5]   ;;  %s473_s26 = scalar_lea.vmem %s22_s23, 64 }
   0xb   :  { %34 = dma.vmem_to_smem %s32_s20, 16, %s501_s25, [#allocation6]  }
   0xc   :  { %p474_p5 = scmp.ne.s32.totalorder %s22_s23, %s473_s26  ;;  %p478_p6 = scmp.lt.s32.totalorder %s22_s23, %s22_s23 }
   0xd   :  { %p479_p7 = scmp.lt.s32.totalorder %s473_s26, %s473_s26 }
   0xf   :  { %p480_p8 = por %p479_p7, %p478_p6 }
  0x11   :  { %p481_p9 = pnand %p480_p8, %p474_p5 }
  0x13   :  { %484 = shalt.err (!%p481_p9)
}
  0x14   :  { %s502_s2 = smov [#allocation3]   ;;  %s41_s28 = sshll.u32 %s887_s3, 4  ;;  %s42_s28 = int_to_ptr.vmem [resolvable:$true] %s41_s28 }
  0x15   :  { %24 = dma.vmem_to_smem %s22_s23, 64, %s502_s2, [#allocation4]  }
  0x16   :  { %s485_s29 = scalar_lea.vmem %s42_s28, 16  ;;  %p490_p11 = scmp.lt.s32.totalorder %s42_s28, %s42_s28 }
  0x17   :  { %p486_p10 = scmp.ne.s32.totalorder %s42_s28, %s485_s29  ;;  %p491_p12 = scmp.lt.s32.totalorder %s485_s29, %s485_s29 }
  0x19   :  { %p492_p13 = por %p491_p12, %p490_p11 }
  0x1b   :  { %p493_p0 = pnand %p492_p13, %p486_p10 }
  0x1d   :  { %496 = shalt.err (!%p493_p0)
}
  0x1e   :  { %s503_s30 = smov [#allocation7]  }
  0x1f   :  { %44 = dma.vmem_to_smem %s42_s28, 16, %s503_s30, [#allocation6]  }
  0x20   :  { %497 = dma.done.wait [#allocation4], 64  }
  0x21   :  { %498 = vsyncadd [#allocation4], 4294967232 }
  0x22   :  { %499 = dma.done.wait [#allocation6], 32  }
  0x23   :  { %500 = vsyncadd [#allocation6], 4294967264 }
  0x24   :  { %56 = sfence }
  0x25   :  { %s543_s6 = sld [smem:[#allocation3]]  ;;  %s545_s7 = sld [smem:[#allocation3 + $0x1]]  ;;  %v578_v0 = vld [vmem:[%s884_s0] sm:$0xff]  ;;  %v145_v6 = vstv %s888_s4  ;;  %v620_v18 = vld [vmem:[%s884_s0 + $0x8] sm:$0xff]  ;;  %v695_v51 = vld [vmem:[%s884_s0 + $0x10] sm:$0xff] }
  0x26   :  { %s547_s3 = sld [smem:[#allocation3 + $0x2]]  ;;  %s549_s8 = sld [smem:[#allocation3 + $0x3]] }
  0x27   :  { %s551_s9 = sld [smem:[#allocation3 + $0x4]]  ;;  %s553_s10 = sld [smem:[#allocation3 + $0x5]] }
  0x28   :  { %s555_s11 = sld [smem:[#allocation3 + $0x6]]  ;;  %s557_s12 = sld [smem:[#allocation3 + $0x7]] }
  0x29   :  { %s559_s13 = sld [smem:[#allocation3 + $0x8]]  ;;  %s561_s14 = sld [smem:[#allocation3 + $0x9]] }
  0x2a   :  { %s563_s15 = sld [smem:[#allocation3 + $0xa]]  ;;  %s565_s16 = sld [smem:[#allocation3 + $0xb]] }
  0x2b   :  { %s567_s17 = sld [smem:[#allocation3 + $0xc]]  ;;  %s569_s18 = sld [smem:[#allocation3 + $0xd]]  ;;  %v146_v1 = vstv %s543_s6  ;;  %v160_v2 = vstv %s545_s7 }
  0x2c   :  { %s571_s19 = sld [smem:[#allocation3 + $0xe]]  ;;  %s573_s20 = sld [smem:[#allocation3 + $0xf]]  ;;  %v174_v3 = vstv %s547_s3  ;;  %v188_v4 = vstv %s549_s8  ;;  %v147_v10 = vmul.f32 %v146_v1, %v578_v0  ;;  %v161_v11 = vmul.f32 %v160_v2, %v578_v0 }
  0x2d   :  { %s582_s23 = sld [smem:[#allocation3 + $0x80]]  ;;  %s584_s24 = sld [smem:[#allocation3 + $0x81]]  ;;  %v202_v5 = vstv %s551_s9  ;;  %v216_v7 = vstv %s553_s10  ;;  %v175_v14 = vmul.f32 %v174_v3, %v578_v0  ;;  %v189_v15 = vmul.f32 %v188_v4, %v578_v0 }
  0x2e   :  { %s589_s25 = sld [smem:[#allocation3 + $0x82]]  ;;  %s591_s26 = sld [smem:[#allocation3 + $0x83]]  ;;  %v230_v8 = vstv %s555_s11  ;;  %v244_v9 = vstv %s557_s12  ;;  %v203_v16 = vmul.f32 %v202_v5, %v578_v0  ;;  %v217_v19 = vmul.f32 %v216_v7, %v578_v0 }
  0x2f   :  { %s599_s27 = sld [smem:[#allocation3 + $0x84]]  ;;  %s601_s28 = sld [smem:[#allocation3 + $0x85]]  ;;  %v258_v12 = vstv %s559_s13  ;;  %v272_v13 = vstv %s561_s14  ;;  %v231_v20 = vmul.f32 %v230_v8, %v578_v0  ;;  %v625_v21 = vmul.f32 %v244_v9, %v578_v0 }
  0x30   :  { %s607_s29 = sld [smem:[#allocation3 + $0x86]]  ;;  %s609_s30 = sld [smem:[#allocation3 + $0x87]]  ;;  %v286_v17 = vstv %s563_s15  ;;  %v628_v22 = vmul.f32 %v258_v12, %v578_v0  ;;  %v635_v23 = vmul.f32 %v272_v13, %v578_v0  ;;  %v300_v25 = vstv %s565_s16 }
  0x31   :  { %s615_s6 = sld [smem:[#allocation3 + $0x88]]  ;;  %s630_s8 = sld [smem:[#allocation3 + $0x89]]  ;;  %v638_v24 = vmul.f32 %v286_v17, %v578_v0  ;;  %v314_v26 = vstv %s567_s17  ;;  %v328_v29 = vstv %s569_s18  ;;  %v667_v41 = vmul.f32 %v300_v25, %v578_v0 }
  0x32   :  { %s632_s9 = sld [smem:[#allocation3 + $0x8a]]  ;;  %s642_s10 = sld [smem:[#allocation3 + $0x8b]]  ;;  %v342_v30 = vstv %s571_s19  ;;  %v670_v42 = vmul.f32 %v314_v26, %v578_v0  ;;  %v679_v45 = vmul.f32 %v328_v29, %v578_v0  ;;  %v356_v46 = vstv %s573_s20 }
  0x33   :  { %v148_v27 = vstv %s582_s23  ;;  %v162_v28 = vstv %s584_s24  ;;  %s652_s11 = sld [smem:[#allocation3 + $0x100]]  ;;  %s654_s12 = sld [smem:[#allocation3 + $0x101]]  ;;  %v688_v50 = vmul.f32 %v342_v30, %v578_v0 }
  0x34   :  { %v149_v31 = vmul.f32 %v620_v18, %v148_v27  ;;  %v163_v32 = vmul.f32 %v620_v18, %v162_v28  ;;  %v176_v33 = vstv %s589_s25  ;;  %v190_v34 = vstv %s591_s26  ;;  %s660_s13 = sld [smem:[#allocation3 + $0x102]]  ;;  %s662_s14 = sld [smem:[#allocation3 + $0x103]] }
  0x35   :  { %v177_v35 = vmul.f32 %v620_v18, %v176_v33  ;;  %v191_v36 = vmul.f32 %v620_v18, %v190_v34  ;;  %v204_v37 = vstv %s599_s27  ;;  %v218_v38 = vstv %s601_s28  ;;  %s672_s15 = sld [smem:[#allocation3 + $0x104]]  ;;  %s674_s16 = sld [smem:[#allocation3 + $0x105]] }
  0x36   :  { %v205_v39 = vmul.f32 %v620_v18, %v204_v37  ;;  %v219_v40 = vmul.f32 %v620_v18, %v218_v38  ;;  %v232_v43 = vstv %s607_s29  ;;  %v246_v44 = vstv %s609_s30  ;;  %s682_s17 = sld [smem:[#allocation3 + $0x106]]  ;;  %s684_s18 = sld [smem:[#allocation3 + $0x107]] }
  0x37   :  { %v150_v47 = vadd.f32 %v149_v31, %v147_v10  ;;  %v164_v48 = vadd.f32 %v163_v32, %v161_v11  ;;  %v233_v49 = vmul.f32 %v620_v18, %v232_v43  ;;  %s690_s19 = sld [smem:[#allocation3 + $0x108]]  ;;  %v178_v52 = vadd.f32 %v177_v35, %v175_v14  ;;  %s697_s23 = sld [smem:[#allocation3 + $0x109]] }
  0x38   :  { %v192_v53 = vadd.f32 %v191_v36, %v189_v15  ;;  %v206_v54 = vadd.f32 %v205_v39, %v203_v16  ;;  %v220_v55 = vadd.f32 %v219_v40, %v217_v19  ;;  %v247_v56 = vmul.f32 %v620_v18, %v246_v44  ;;  %s706_s0 = sld [smem:[#allocation3 + $0x10a]]  ;;  %s712_s24 = sld [smem:[#allocation5]] }
  0x39   :  { %v260_v57 = vstv %s615_s6  ;;  %v274_v58 = vstv %s630_s8  ;;  %v288_v59 = vstv %s632_s9  ;;  %v151_v60 = vstv %s652_s11  ;;  %s714_s25 = sld [smem:[#allocation5 + $0x1]]  ;;  %s720_s26 = sld [smem:[#allocation5 + $0x2]] }
  0x3a   :  { %v165_v61 = vstv %s654_s12  ;;  %v234_v62 = vadd.f32 %v233_v49, %v231_v20  ;;  %v302_v63 = vstv %s642_s10  ;;  %v152_v1 = vmul.f32 %v695_v51, %v151_v60  ;;  %s722_s2 = sld [smem:[#allocation5 + $0x3]]  ;;  %s728_s1 = sld [smem:[#allocation5 + $0x4]] }
  0x3b   :  { %v166_v2 = vmul.f32 %v695_v51, %v165_v61  ;;  %v179_v3 = vstv %s660_s13  ;;  %v193_v4 = vstv %s662_s14  ;;  %v207_v8 = vstv %s672_s15  ;;  %s730_s27 = sld [smem:[#allocation5 + $0x5]]  ;;  %s736_s28 = sld [smem:[#allocation5 + $0x6]] }
  0x3c   :  { %v180_v5 = vmul.f32 %v695_v51, %v179_v3  ;;  %v194_v7 = vmul.f32 %v695_v51, %v193_v4  ;;  %v221_v9 = vstv %s674_s16  ;;  %v208_v10 = vmul.f32 %v695_v51, %v207_v8  ;;  %s738_s29 = sld [smem:[#allocation5 + $0x7]]  ;;  %s742_s30 = sld [smem:[#allocation5 + $0x8]] }
  0x3d   :  { %v222_v11 = vmul.f32 %v695_v51, %v221_v9  ;;  %v261_v12 = vmul.f32 %v620_v18, %v260_v57  ;;  %v275_v13 = vmul.f32 %v620_v18, %v274_v58  ;;  %v235_v14 = vstv %s682_s17  ;;  %s748_s6 = sld [smem:[#allocation5 + $0x9]]  ;;  %s753_s7 = sld [smem:[#allocation5 + $0xa]] }
  0x3e   :  { %v248_v15 = vadd.f32 %v247_v56, %v625_v21  ;;  %v249_v16 = vstv %s684_s18  ;;  %v289_v17 = vmul.f32 %v620_v18, %v288_v59  ;;  %v153_v19 = vadd.f32 %v152_v1, %v150_v47  ;;  %s757_s3 = sld [smem:[#allocation7]]  ;;  %s759_s8 = sld [smem:[#allocation7 + $0x1]] }
  0x3f   :  { %v167_v20 = vadd.f32 %v166_v2, %v164_v48  ;;  %v181_v25 = vadd.f32 %v180_v5, %v178_v52  ;;  %v236_v26 = vmul.f32 %v695_v51, %v235_v14  ;;  %v195_v27 = vadd.f32 %v194_v7, %v192_v53  ;;  %s763_s9 = sld [smem:[#allocation7 + $0x2]]  ;;  %s765_s11 = sld [smem:[#allocation7 + $0x3]] }
  0x40   :  { %v209_v28 = vadd.f32 %v208_v10, %v206_v54  ;;  %v223_v29 = vadd.f32 %v222_v11, %v220_v55  ;;  %v263_v21 = vstv %s690_s19  ;;  %v250_v30 = vmul.f32 %v695_v51, %v249_v16  ;;  %s768_s12 = sld [smem:[#allocation7 + $0x4]]  ;;  %s770_s13 = sld [smem:[#allocation7 + $0x5]] }
  0x41   :  { %v262_v31 = vadd.f32 %v261_v12, %v628_v22  ;;  %v276_v32 = vadd.f32 %v275_v13, %v635_v23  ;;  %v277_v33 = vstv %s697_s23  ;;  %v154_v34 = vstv %s712_s24  ;;  %s778_s14 = sld [smem:[#allocation7 + $0x6]]  ;;  %s780_s15 = sld [smem:[#allocation7 + $0x7]] }
  0x42   :  { %v168_v35 = vstv %s714_s25  ;;  %v237_v36 = vadd.f32 %v236_v26, %v234_v62  ;;  %v264_v37 = vmul.f32 %v695_v51, %v263_v21  ;;  %v155_v38 = vadd.f32 %v154_v34, %v153_v19  ;;  %s783_s10 = sld [smem:[#allocation3 + $0x10b]]  ;;  %s785_s16 = sld [smem:[#allocation7 + $0x8]] }
  0x43   :  { %v169_v39 = vadd.f32 %v168_v35, %v167_v20  ;;  %v182_v40 = vstv %s720_s26  ;;  %v196_v43 = vstv %s722_s2  ;;  %v210_v44 = vstv %s728_s1  ;;  %s788_s17 = sld [smem:[#allocation3 + $0x8c]]  ;;  %s790_s18 = sld [smem:[#allocation5 + $0xb]] }
  0x44   :  { %v183_v22 = vadd.f32 %v182_v40, %v181_v25  ;;  %v197_v23 = vadd.f32 %v196_v43, %v195_v27  ;;  %v224_v47 = vstv %s730_s27  ;;  %v211_v48 = vadd.f32 %v210_v44, %v209_v28  ;;  %s795_s19 = sld [smem:[#allocation3 + $0x10c]]  ;;  %s799_s21 = sld [smem:[#allocation7 + $0x9]] }
  0x45   :  { %v225_v49 = vadd.f32 %v224_v47, %v223_v29  ;;  %v251_v52 = vadd.f32 %v250_v30, %v248_v15  ;;  %v278_v53 = vmul.f32 %v695_v51, %v277_v33  ;;  %v238_v54 = vstv %s736_s28  ;;  %s804_s22 = sld [smem:[#allocation3 + $0x8d]]  ;;  %s813_s25 = sld [smem:[#allocation5 + $0xc]] }
  0x46   :  { %v252_v55 = vstv %s738_s29  ;;  %v290_v56 = vadd.f32 %v289_v17, %v638_v24  ;;  %v303_v57 = vmul.f32 %v620_v18, %v302_v63  ;;  %v156_v58 = vmax.f32 %v155_v38, 0.0  ;;  %s806_s23 = sld [smem:[#allocation3 + $0x10d]]  ;;  %s822_s26 = sld [smem:[#allocation3 + $0x8e]] }
  0x47   :  { %v170_v59 = vmax.f32 %v169_v39, 0.0  ;;  %v239_v60 = vadd.f32 %v238_v54, %v237_v36  ;;  %v291_v61 = vstv %s706_s0  ;;  %v184_v62 = vmax.f32 %v183_v22, 0.0  ;;  %s824_s2 = sld [smem:[#allocation7 + $0xa]]  ;;  %s826_s4 = sld [smem:[#allocation3 + $0x10e]] }
  0x48   :  { %v198_v1 = vmax.f32 %v197_v23, 0.0  ;;  %v212_v2 = vmax.f32 %v211_v48, 0.0  ;;  %v265_v3 = vadd.f32 %v264_v37, %v262_v31  ;;  %v226_v24 = vmax.f32 %v225_v49, 0.0  ;;  %s828_s1 = sld [smem:[#allocation5 + $0xd]]  ;;  %s833_s20 = sld [smem:[#allocation7 + $0xb]] }
  0x49   :  { %v253_v63 = vadd.f32 %v252_v55, %v251_v52  ;;  %v266_v4 = vstv %s742_s30  ;;  %v279_v5 = vadd.f32 %v278_v53, %v276_v32  ;;  %v157_v7 = vstv %s757_s3  ;;  %s838_s27 = sld [smem:[#allocation3 + $0x8f]]  ;;  %s844_s29 = sld [smem:[#allocation5 + $0xe]] }
  0x4a   :  { %v171_v8 = vstv %s759_s8  ;;  %v240_v9 = vmax.f32 %v239_v60, 0.0  ;;  %v280_v10 = vstv %s748_s6  ;;  %v158_v11 = vmul.f32 %v157_v7, %v156_v58  ;;  %s842_s28 = sld [smem:[#allocation3 + $0x10f]]  ;;  %s851_s30 = sld [smem:[#allocation7 + $0xc]] }
  0x4b   :  { %v172_v12 = vmul.f32 %v171_v8, %v170_v59  ;;  %v185_v13 = vstv %s763_s9  ;;  %v292_v14 = vmul.f32 %v695_v51, %v291_v61  ;;  %v199_v15 = vstv %s765_s11  ;;  %s856_s6 = sld [smem:[#allocation5 + $0xf]]  ;;  %s867_s3 = sld [smem:[#allocation7 + $0xe]] }
  0x4c   :  { %v213_v16 = vstv %s768_s12  ;;  %v227_v17 = vstv %s770_s13  ;;  %v267_v19 = vadd.f32 %v266_v4, %v265_v3  ;;  %v159_v20 = vadd.f32 %v158_v11, %v145_v6  ;;  %s455_s8 = sld [smem:[#allocation7 + $0xf]] }
  0x4d   :  { %v186_v25 = vmul.f32 %v185_v13, %v184_v62  ;;  %v241_v26 = vstv %s778_s14  ;;  %v254_v27 = vmax.f32 %v253_v63, 0.0  ;;  %v255_v28 = vstv %s780_s15 }
  0x4e   :  { %v281_v29 = vadd.f32 %v280_v10, %v279_v5  ;;  %v294_v21 = vstv %s753_s7  ;;  %v820_v30 = vmul.f32 %v356_v46, %v578_v0  ;;  %v173_v31 = vadd.f32 %v172_v12, %v159_v20  ;;  %s859_s7 = sld [smem:[#allocation7 + $0xd]] }
  0x4f   :  { %v200_v6 = vmul.f32 %v199_v15, %v198_v1  ;;  %v214_v32 = vmul.f32 %v213_v16, %v212_v2  ;;  %v228_v33 = vmul.f32 %v227_v17, %v226_v24  ;;  %v242_v34 = vmul.f32 %v241_v26, %v240_v9 }
  0x50   :  { %v268_v35 = vmax.f32 %v267_v19, 0.0  ;;  %v293_v0 = vadd.f32 %v292_v14, %v290_v56  ;;  %v304_v46 = vadd.f32 %v303_v57, %v667_v41  ;;  %v187_v36 = vadd.f32 %v186_v25, %v173_v31 }
  0x51   :  { %v256_v37 = vmul.f32 %v255_v28, %v254_v27  ;;  %v269_v38 = vstv %s785_s16  ;;  %v305_v39 = vstv %s783_s10  ;;  %v282_v40 = vmax.f32 %v281_v29, 0.0 }
  0x52   :  { %v306_v43 = vmul.f32 %v695_v51, %v305_v39  ;;  %v308_v22 = vstv %s790_s18  ;;  %v316_v23 = vstv %s788_s17  ;;  %v201_v44 = vadd.f32 %v200_v6, %v187_v36 }
  0x53   :  { %v295_v47 = vadd.f32 %v294_v21, %v293_v0  ;;  %v317_v41 = vmul.f32 %v620_v18, %v316_v23  ;;  %v319_v48 = vstv %s795_s19  ;;  %v270_v49 = vmul.f32 %v269_v38, %v268_v35 }
  0x54   :  { %v283_v52 = vstv %s799_s21  ;;  %v307_v53 = vadd.f32 %v306_v43, %v304_v46  ;;  %v320_v54 = vmul.f32 %v695_v51, %v319_v48  ;;  %v215_v55 = vadd.f32 %v214_v32, %v201_v44 }
  0x55   :  { %v318_v56 = vadd.f32 %v317_v41, %v670_v42  ;;  %v330_v57 = vstv %s804_s22  ;;  %v333_v58 = vstv %s806_s23  ;;  %v322_v60 = vstv %s813_s25 }
  0x56   :  { %v309_v59 = vadd.f32 %v308_v22, %v307_v53  ;;  %v331_v61 = vmul.f32 %v620_v18, %v330_v57  ;;  %v334_v62 = vmul.f32 %v695_v51, %v333_v58  ;;  %v229_v1 = vadd.f32 %v228_v33, %v215_v55 }
  0x57   :  { %v296_v2 = vmax.f32 %v295_v47, 0.0  ;;  %v297_v3 = vstv %s824_s2  ;;  %v321_v24 = vadd.f32 %v320_v54, %v318_v56  ;;  %v336_v63 = vstv %s828_s1 }
  0x58   :  { %v332_v42 = vadd.f32 %v331_v61, %v679_v45  ;;  %v344_v4 = vstv %s822_s26  ;;  %v347_v5 = vstv %s826_s4  ;;  %v243_v7 = vadd.f32 %v242_v34, %v229_v1 }
  0x59   :  { %v323_v8 = vadd.f32 %v322_v60, %v321_v24  ;;  %v345_v9 = vmul.f32 %v620_v18, %v344_v4  ;;  %v348_v10 = vmul.f32 %v695_v51, %v347_v5  ;;  %v284_v11 = vmul.f32 %v283_v52, %v282_v40 }
  0x5a   :  { %v310_v12 = vmax.f32 %v309_v59, 0.0  ;;  %v311_v13 = vstv %s833_s20  ;;  %v335_v14 = vadd.f32 %v334_v62, %v332_v42  ;;  %v257_v45 = vadd.f32 %v256_v37, %v243_v7 }
  0x5b   :  { %v298_v15 = vmul.f32 %v297_v3, %v296_v2  ;;  %v346_v16 = vadd.f32 %v345_v9, %v688_v50  ;;  %v358_v17 = vstv %s838_s27  ;;  %v350_v20 = vstv %s844_s29 }
  0x5c   :  { %v337_v19 = vadd.f32 %v336_v63, %v335_v14  ;;  %v359_v25 = vmul.f32 %v620_v18, %v358_v17  ;;  %v361_v26 = vstv %s842_s28  ;;  %v271_v27 = vadd.f32 %v270_v49, %v257_v45 }
  0x5d   :  { %v324_v28 = vmax.f32 %v323_v8, 0.0  ;;  %v349_v29 = vadd.f32 %v348_v10, %v346_v16  ;;  %v362_v21 = vmul.f32 %v695_v51, %v361_v26  ;;  %v312_v31 = vmul.f32 %v311_v13, %v310_v12 }
  0x5e   :  { %v325_v6 = vstv %s851_s30  ;;  %v360_v32 = vadd.f32 %v359_v25, %v820_v30  ;;  %v285_v50 = vadd.f32 %v284_v11, %v271_v27  ;;  %v338_v33 = vmax.f32 %v337_v19, 0.0 }
  0x5f   :  { %v351_v34 = vadd.f32 %v350_v20, %v349_v29  ;;  %v364_v35 = vstv %s856_s6  ;;  %v339_v0 = vstv %s859_s7  ;;  %v326_v37 = vmul.f32 %v325_v6, %v324_v28 }
  0x60   :  { %v363_v46 = vadd.f32 %v362_v21, %v360_v32  ;;  %v299_v36 = vadd.f32 %v298_v15, %v285_v50  ;;  %v353_v38 = vstv %s867_s3  ;;  %v340_v43 = vmul.f32 %v339_v0, %v338_v33 }
  0x61   :  { %v352_v18 = vmax.f32 %v351_v34, 0.0  ;;  %v367_v23 = vstv %s455_s8 }
  0x62   :  { %v365_v39 = vadd.f32 %v364_v35, %v363_v46  ;;  %v313_v40 = vadd.f32 %v312_v31, %v299_v36 }
  0x63   :  { %v354_v44 = vmul.f32 %v353_v38, %v352_v18 }
  0x64   :  { %v366_v22 = vmax.f32 %v365_v39, 0.0  ;;  %v327_v51 = vadd.f32 %v326_v37, %v313_v40 }
  0x66   :  { %v341_v47 = vadd.f32 %v340_v43, %v327_v51  ;;  %v368_v41 = vmul.f32 %v367_v23, %v366_v22 }
  0x68   :  { %v355_v30 = vadd.f32 %v354_v44, %v341_v47 }
  0x6a   :  { %v369_v48 = vadd.f32 %v368_v41, %v355_v30 }
  0x6c   :  { %370 = vst [vmem:[%s889_s5] sm:$0xff] %v369_v48 }
  0x6d   :  { %375 = vsyncpa [#allocation4], 1 }
  0x6e   :  { %376 = vsyncpa [#allocation6], 1 }

</bundles_post_ra>
